<compile_context>
chip_gen: v7x
topology: tpu7x:2x2x1
jax: 0.10.0
libtpu: 0.0.40
codegen_flags: <defaults>
</compile_context>

<pallas_src>
import functools

import jax
import jax.numpy as jnp
from jax.experimental import pallas as pl
from jax.experimental.pallas import tpu as pltpu


LANE = 128
X_RESIDENT_BYTES = 8 << 20      # keep X fully resident in VMEM below this
FUSED_MAX_NPAD = 1024           # small-graph fully-fused path limits
FUSED_MAX_CPAD = 512
VMEM_LIMIT = 48 << 20           # < v7x's 64 MiB physical, > old 32 MiB cap


def _round_up(x, m):
    return (x + m - 1) // m * m


def _apply_epilogue(out, epilogue, valid_cols):
    """Epilogue on the f32 accumulator: relu or padded-lane-masked log_softmax."""
    if epilogue == "relu":
        return jnp.maximum(out, 0.0)
    if epilogue == "log_softmax":
        lane = jax.lax.broadcasted_iota(jnp.int32, out.shape, 1)
        out = jnp.where(lane < valid_cols, out, -1e30)
        m = jnp.max(out, axis=-1, keepdims=True)
        s = out - m
        lse = jnp.log(jnp.sum(jnp.exp(s), axis=-1, keepdims=True))
        return s - lse
    return out


# --------------------- Tiled per-layer SAGEConv kernel -----------------------

def sage_conv_kernel(*refs, tm, tk, x_resident, epilogue, valid_cols):
    """One SAGEConv layer: out = (A @ X) @ W_l + X @ W_r + b  [+ relu | log_softmax].

    Grid: (dst tiles i, src/reduction tiles k).  The f32 VMEM accumulator holds
    only the aggregation A@X; the W_l / W_r projections and the epilogue run
    once per i-tile at k == last.
    """
    if x_resident:
        a_ref, x_ref, wl_ref, wr_ref, b_ref, o_ref, acc_ref = refs
    else:
        a_ref, xs_ref, xd_ref, wl_ref, wr_ref, b_ref, o_ref, acc_ref = refs

    i = pl.program_id(0)
    k = pl.program_id(1)

    @pl.when(k == 0)
    def _():
        acc_ref[...] = jnp.zeros_like(acc_ref)

    if x_resident:
        xs = x_ref[pl.ds(pl.multiple_of(k * tk, tk), tk), :]
    else:
        xs = xs_ref[...]

    # Aggregation only (no W_l here): one MXU call per (i, k) grid point.
    acc_ref[...] += jnp.dot(a_ref[...], xs, preferred_element_type=jnp.float32)

    @pl.when(k == pl.num_programs(1) - 1)
    def _():
        if x_resident:
            xd = x_ref[pl.ds(pl.multiple_of(i * tm, tm), tm), :]
        else:
            xd = xd_ref[...]
        out = jnp.dot(acc_ref[...].astype(jnp.bfloat16), wl_ref[...],
                      preferred_element_type=jnp.float32)
        out = out + jnp.dot(xd, wr_ref[...], preferred_element_type=jnp.float32)
        out = out + b_ref[...]
        out = _apply_epilogue(out, epilogue, valid_cols)
        o_ref[...] = out.astype(o_ref.dtype)


def sage_conv(a, x, w_l, w_r, b, *, epilogue, valid_cols, out_dtype, tm, tk):
    n_pad = a.shape[0]
    c_in_pad = x.shape[1]
    c_out_pad = w_l.shape[1]
    grid = (n_pad // tm, n_pad // tk)

    x_resident = (n_pad * c_in_pad * 2) <= X_RESIDENT_BYTES

    kernel = functools.partial(
        sage_conv_kernel, tm=tm, tk=tk, x_resident=x_resident,
        epilogue=epilogue, valid_cols=valid_cols)

    a_spec = pl.BlockSpec((tm, tk), lambda i, k: (i, k))
    w_spec = pl.BlockSpec((c_in_pad, c_out_pad), lambda i, k: (0, 0))
    b_spec = pl.BlockSpec((1, c_out_pad), lambda i, k: (0, 0))
    if x_resident:
        in_specs = [
            a_spec,
            pl.BlockSpec((n_pad, c_in_pad), lambda i, k: (0, 0)),   # X resident
            w_spec, w_spec, b_spec,
        ]
        args = (a, x, w_l, w_r, b)
    else:
        in_specs = [
            a_spec,
            pl.BlockSpec((tk, c_in_pad), lambda i, k: (k, 0)),      # X (sources)
            pl.BlockSpec((tm, c_in_pad), lambda i, k: (i, 0)),      # X (dst/self)
            w_spec, w_spec, b_spec,
        ]
        args = (a, x, x, w_l, w_r, b)

    return pl.pallas_call(
        kernel,
        out_shape=jax.ShapeDtypeStruct((n_pad, c_out_pad), out_dtype),
        grid_spec=pltpu.PrefetchScalarGridSpec(
            num_scalar_prefetch=0,
            grid=grid,
            in_specs=in_specs,
            out_specs=pl.BlockSpec((tm, c_out_pad), lambda i, k: (i, 0)),
            scratch_shapes=[pltpu.VMEM((tm, c_in_pad), jnp.float32)],
        ),
        compiler_params=pltpu.CompilerParams(
            dimension_semantics=("parallel", "arbitrary"),
            vmem_limit_bytes=VMEM_LIMIT,
        ),
    )(*args)


# ------------- Fully-fused all-layers kernel for small graphs ----------------

def sage_fused_kernel(a_ref, x_ref, w_ref, b_ref, o_ref, h_ref, *,
                      c_pad, valid_cols):
    """All SAGE layers in one launch.  grid=(num_layers,); per-layer weights are
    streamed (block index = layer); activations live in the VMEM scratch h_ref."""
    l = pl.program_id(0)
    last = pl.num_programs(0) - 1

    @pl.when(l == 0)
    def _():
        h_ref[...] = x_ref[...]

    h = h_ref[...]
    agg = jnp.dot(a_ref[...], h, preferred_element_type=jnp.float32)
    out = jnp.dot(agg.astype(jnp.bfloat16), w_ref[:c_pad, :],
                  preferred_element_type=jnp.float32)
    out = out + jnp.dot(h, w_ref[c_pad:, :], preferred_element_type=jnp.float32)
    out = out + b_ref[...]

    @pl.when(l != last)
    def _():
        h_ref[...] = jnp.maximum(out, 0.0).astype(jnp.bfloat16)
        # TODO(synk): dropout (training mode) via pltpu.stateful_bernoulli; identity in eval.

    @pl.when(l == last)
    def _():
        o_ref[...] = _apply_epilogue(out, "log_softmax", valid_cols)


def _sage_forward_fused(params, x, edge_index, edge_weight, n):
    num_layers = len(params)
    dims = [params[0]["w_l"].shape[0]] + [p["w_l"].shape[1] for p in params]
    c_pad = max(_round_up(d, LANE) for d in dims)
    n_pad = _round_up(n, LANE)

    a = build_norm_adj(edge_index, edge_weight, n, n_pad)
    x = jnp.pad(x, ((0, n_pad - n), (0, c_pad - x.shape[1]))).astype(jnp.bfloat16)

    w_stack, b_stack = [], []
    for p in params:
        f_in, f_out = p["w_l"].shape
        w_l = jnp.pad(p["w_l"], ((0, c_pad - f_in), (0, c_pad - f_out)))
        w_r = jnp.pad(p["w_r"], ((0, c_pad - f_in), (0, c_pad - f_out)))
        w_stack.append(jnp.concatenate([w_l, w_r], axis=0).astype(jnp.bfloat16))
        b_stack.append(jnp.pad(p["b_l"] + p["b_r"], (0, c_pad - f_out))
                       .reshape(1, c_pad).astype(jnp.float32))
    w = jnp.stack(w_stack, axis=0)      # (L, 2*c_pad, c_pad) bf16
    b = jnp.stack(b_stack, axis=0)      # (L, 1, c_pad) f32

    out = pl.pallas_call(
        functools.partial(sage_fused_kernel, c_pad=c_pad,
                          valid_cols=params[-1]["w_l"].shape[1]),
        out_shape=jax.ShapeDtypeStruct((n_pad, c_pad), jnp.float32),
        grid_spec=pltpu.PrefetchScalarGridSpec(
            num_scalar_prefetch=0,
            grid=(num_layers,),
            in_specs=[
                pl.BlockSpec((n_pad, n_pad), lambda l: (0, 0)),          # A (fetched once)
                pl.BlockSpec((n_pad, c_pad), lambda l: (0, 0)),          # X0 (fetched once)
                pl.BlockSpec((None, 2 * c_pad, c_pad), lambda l: (l, 0, 0)),  # [W_l;W_r] per layer
                pl.BlockSpec((None, 1, c_pad), lambda l: (l, 0, 0)),          # bias per layer
            ],
            out_specs=pl.BlockSpec((n_pad, c_pad), lambda l: (0, 0)),
            scratch_shapes=[pltpu.VMEM((n_pad, c_pad), jnp.bfloat16)],
        ),
        compiler_params=pltpu.CompilerParams(
            dimension_semantics=("arbitrary",),
            vmem_limit_bytes=VMEM_LIMIT,
        ),
    )(a, x, w, b)
    return out[:n, :params[-1]["w_l"].shape[1]]


# ------------------------------ Host wrappers --------------------------------

def build_norm_adj(edge_index, edge_weight, num_nodes, n_pad):
    """Dense row-normalized adjacency (padded to n_pad) so that A @ X equals the
    mean aggregation of edge_weight-scaled source->target messages (PyG)."""
    src = edge_index[0]
    dst = edge_index[1]
    if edge_weight is None:
        edge_weight = jnp.ones(src.shape, jnp.float32)
    a = jnp.zeros((n_pad, n_pad), jnp.float32).at[dst, src].add(edge_weight)
    deg = jnp.zeros((n_pad,), jnp.float32).at[dst].add(1.0)  # mean divides by edge count
    deg = jnp.maximum(deg, 1.0)
    return (a / deg[:, None]).astype(jnp.bfloat16)


def init_sage_params(key, in_channels, hidden_channels, out_channels, num_layers):
    dims = [in_channels] + [hidden_channels] * (num_layers - 1) + [out_channels]
    params = []
    for l in range(num_layers):
        f_in, f_out = dims[l], dims[l + 1]
        k = jax.random.fold_in(key, l)
        k1, k2, k3, k4 = jax.random.split(k, 4)
        scale = 1.0 / jnp.sqrt(jnp.float32(f_in))
        params.append(dict(
            w_l=jax.random.uniform(k1, (f_in, f_out), jnp.float32, -scale, scale),
            b_l=jax.random.uniform(k2, (f_out,), jnp.float32, -scale, scale),
            w_r=jax.random.uniform(k3, (f_in, f_out), jnp.float32, -scale, scale),
            b_r=jax.random.uniform(k4, (f_out,), jnp.float32, -scale, scale),
        ))
    return params


def _sage_forward_tiled(params, x, edge_index, edge_weight, n):
    c_in = x.shape[1]
    n_pad_small = _round_up(n, LANE)

    # Tiling plan: big A/reduction tiles (mem-bound on the A stream) and
    # always >= 2 blocks along the parallel dst axis when possible (v7x 2 TCs).
    if n_pad_small <= 1024:
        n_pad = n_pad_small
        tk = n_pad
        tm = n_pad // 2 if n_pad >= 256 else n_pad
    else:
        tk = 1024
        n_pad = _round_up(n, tk)
        tm = 512

    a = build_norm_adj(edge_index, edge_weight, n, n_pad)
    c_in_pad = _round_up(c_in, LANE)
    x = jnp.pad(x, ((0, n_pad - n), (0, c_in_pad - c_in))).astype(jnp.bfloat16)

    num_layers = len(params)
    for l, p in enumerate(params):
        f_in, f_out = p["w_l"].shape
        f_in_pad = _round_up(f_in, LANE)
        f_out_pad = _round_up(f_out, LANE)
        w_l = jnp.pad(p["w_l"], ((0, f_in_pad - f_in), (0, f_out_pad - f_out))
                      ).astype(jnp.bfloat16)
        w_r = jnp.pad(p["w_r"], ((0, f_in_pad - f_in), (0, f_out_pad - f_out))
                      ).astype(jnp.bfloat16)
        b = jnp.pad(p["b_l"] + p["b_r"], (0, f_out_pad - f_out)
                    ).reshape(1, f_out_pad).astype(jnp.float32)

        is_last = (l == num_layers - 1)
        x = sage_conv(
            a, x, w_l, w_r, b,
            epilogue="log_softmax" if is_last else "relu",
            valid_cols=f_out,
            out_dtype=jnp.float32 if is_last else jnp.bfloat16,
            tm=tm, tk=tk,
        )
        # TODO(synk): dropout (training mode); identity here (eval).

    return x[:n, :params[-1]["w_l"].shape[1]]


def sage_forward(params, x, edge_index, edge_weight=None):
    n = x.shape[0]
    dims = [params[0]["w_l"].shape[0]] + [p["w_l"].shape[1] for p in params]
    c_max_pad = max(_round_up(d, LANE) for d in dims)
    n_pad_small = _round_up(n, LANE)

    # Small graphs: one fused launch, activations resident in VMEM.
    if n_pad_small <= FUSED_MAX_NPAD and c_max_pad <= FUSED_MAX_CPAD:
        return _sage_forward_fused(params, x, edge_index, edge_weight, n)
    return _sage_forward_tiled(params, x, edge_index, edge_weight, n)


# Pure-JAX f32 reference (for tolerance validation of the bf16 kernel path).
def sage_forward_ref(params, x, edge_index, edge_weight=None):
    n = x.shape[0]
    src, dst = edge_index[0], edge_index[1]
    w = edge_weight if edge_weight is not None else jnp.ones(src.shape, jnp.float32)
    a = jnp.zeros((n, n), jnp.float32).at[dst, src].add(w)
    deg = jnp.maximum(jnp.zeros((n,), jnp.float32).at[dst].add(1.0), 1.0)
    a = a / deg[:, None]
    h = x
    for l, p in enumerate(params):
        out = a @ h @ p["w_l"] + h @ p["w_r"] + p["b_l"] + p["b_r"]
        h = jnp.maximum(out, 0.0) if l < len(params) - 1 else out
    return jax.nn.log_softmax(h, axis=-1)


# ---------------------------------- Main -------------------------------------

if __name__ == "__main__":
    key = jax.random.PRNGKey(0)
    (k_feat, k_edge, k_w, k_par,
     k2_feat, k2_edge, k2_w) = jax.random.split(key, 7)

    in_channels, hidden_channels, out_channels, num_layers = 8, 32, 8, 3
    params = init_sage_params(k_par, in_channels, hidden_channels, out_channels,
                              num_layers)

    # --- Case 1: toy graph -> fully-fused single-launch path ------------------
    num_nodes, num_edges = 16, 48
    x = jax.random.normal(k_feat, (num_nodes, in_channels), jnp.float32)
    edge_index = jax.random.randint(k_edge, (2, num_edges), 0, num_nodes, jnp.int32)
    edge_weight = jax.random.uniform(k_w, (num_edges,), jnp.float32, 0.5, 1.5)

    out = jax.block_until_ready(sage_forward(params, x, edge_index, edge_weight))
    assert out.shape == (num_nodes, out_channels)
    row_sums = jnp.sum(jnp.exp(out), axis=-1)
    assert bool(jnp.all(jnp.abs(row_sums - 1.0) < 1e-3))
    ref = sage_forward_ref(params, x, edge_index, edge_weight)
    max_err = float(jnp.max(jnp.abs(out - ref)))
    assert max_err < 0.3, f"fused path: max |pallas - ref| = {max_err}"

    # --- Case 2: larger graph -> tiled path (parallel i-tiles + k-reduction) --
    n2, e2 = 1500, 6000
    x2 = jax.random.normal(k2_feat, (n2, in_channels), jnp.float32)
    ei2 = jax.random.randint(k2_edge, (2, e2), 0, n2, jnp.int32)
    ew2 = jax.random.uniform(k2_w, (e2,), jnp.float32, 0.5, 1.5)

    out2 = jax.block_until_ready(sage_forward(params, x2, ei2, ew2))
    assert out2.shape == (n2, out_channels)
    row_sums2 = jnp.sum(jnp.exp(out2), axis=-1)
    assert bool(jnp.all(jnp.abs(row_sums2 - 1.0) < 1e-3))
    ref2 = sage_forward_ref(params, x2, ei2, ew2)
    max_err2 = float(jnp.max(jnp.abs(out2 - ref2)))
    assert max_err2 < 0.5, f"tiled path: max |pallas - ref| = {max_err2}"

    print("KERNEL_OK")
</pallas_src>

<mosaic_0001>
module attributes {stable_mosaic.version = 11 : i64} {
  func.func @sage_fused_kernel(%arg0: i32, %arg1: memref<128x128xbf16, #tpu.memory_space<vmem>>, %arg2: memref<128x128xbf16, #tpu.memory_space<vmem>>, %arg3: memref<1x256x128xbf16, #tpu.memory_space<vmem>>, %arg4: memref<1x1x128xf32, #tpu.memory_space<vmem>>, %arg5: memref<128x128xf32, #tpu.memory_space<vmem>>, %arg6: memref<128x128xbf16, #tpu.memory_space<vmem>>) attributes {dimension_semantics = [#tpu.dimension_semantics<arbitrary>], iteration_bounds = array<i64: 3>, scalar_prefetch = 0 : i64, scratch_operands = 1 : i64, tpu.core_type = #tpu.core_type<tc>, window_params = [{pipeline_mode = #tpu.pipeline_mode<synchronous>, transform_indices = @transform_0, window_bounds = array<i64: 128, 128>}, {pipeline_mode = #tpu.pipeline_mode<synchronous>, transform_indices = @transform_1, window_bounds = array<i64: 128, 128>}, {transform_indices = @transform_2, window_bounds = array<i64: 1, 256, 128>}, {transform_indices = @transform_3, window_bounds = array<i64: 1, 1, 128>}, {pipeline_mode = #tpu.pipeline_mode<synchronous>, transform_indices = @transform_4, window_bounds = array<i64: 128, 128>}]} {
    %c0_i32 = arith.constant 0 : i32
    %0 = arith.cmpi eq, %arg0, %c0_i32 : i32
    %1 = arith.extui %0 : i1 to i32
    %c0_i32_0 = arith.constant 0 : i32
    %2 = arith.cmpi ne, %1, %c0_i32_0 : i32
    scf.if %2 {
      %c0_17 = arith.constant 0 : index
      %c0_18 = arith.constant 0 : index
      %24 = vector.load %arg2[%c0_17, %c0_18] : memref<128x128xbf16, #tpu.memory_space<vmem>>, vector<128x128xbf16>
      %c0_19 = arith.constant 0 : index
      %c0_20 = arith.constant 0 : index
      %25 = vector.load %arg6[%c0_19, %c0_20] : memref<128x128xbf16, #tpu.memory_space<vmem>>, vector<128x128xbf16>
      tpu.vector_store %arg6[%c0_19, %c0_20], %24 {strides = array<i32>} : memref<128x128xbf16, #tpu.memory_space<vmem>>, vector<128x128xbf16>,
    } else {
    }
    %c0 = arith.constant 0 : index
    %c0_1 = arith.constant 0 : index
    %3 = vector.load %arg6[%c0, %c0_1] : memref<128x128xbf16, #tpu.memory_space<vmem>>, vector<128x128xbf16>
    %c0_2 = arith.constant 0 : index
    %c0_3 = arith.constant 0 : index
    %4 = vector.load %arg1[%c0_2, %c0_3] : memref<128x128xbf16, #tpu.memory_space<vmem>>, vector<128x128xbf16>
    %cst = arith.constant dense<0.000000e+00> : vector<128x128xf32>
    %5 = tpu.matmul %4, %3, %cst {dimension_numbers = #tpu.dot_dimension_numbers<[1], [0], [0], [1], [0, 0, 1, 1], [], []>} : vector<128x128xbf16>, vector<128x128xbf16>, vector<128x128xf32> -> vector<128x128xf32>
    %6 = arith.truncf %5 : vector<128x128xf32> to vector<128x128xbf16>
    %c0_4 = arith.constant 0 : index
    %c0_5 = arith.constant 0 : index
    %c0_6 = arith.constant 0 : index
    %7 = vector.load %arg3[%c0_4, %c0_5, %c0_6] : memref<1x256x128xbf16, #tpu.memory_space<vmem>>, vector<1x128x128xbf16>
    %8 = vector.shape_cast %7 : vector<1x128x128xbf16> to vector<128x128xbf16>
    %cst_7 = arith.constant dense<0.000000e+00> : vector<128x128xf32>
    %9 = tpu.matmul %6, %8, %cst_7 {dimension_numbers = #tpu.dot_dimension_numbers<[1], [0], [0], [1], [0, 0, 1, 1], [], []>} : vector<128x128xbf16>, vector<128x128xbf16>, vector<128x128xf32> -> vector<128x128xf32>
    %c0_8 = arith.constant 0 : index
    %c128 = arith.constant 128 : index
    %c0_9 = arith.constant 0 : index
    %10 = vector.load %arg3[%c0_8, %c128, %c0_9] : memref<1x256x128xbf16, #tpu.memory_space<vmem>>, vector<1x128x128xbf16>
    %11 = vector.shape_cast %10 : vector<1x128x128xbf16> to vector<128x128xbf16>
    %cst_10 = arith.constant dense<0.000000e+00> : vector<128x128xf32>
    %12 = tpu.matmul %3, %11, %cst_10 {dimension_numbers = #tpu.dot_dimension_numbers<[1], [0], [0], [1], [0, 0, 1, 1], [], []>} : vector<128x128xbf16>, vector<128x128xbf16>, vector<128x128xf32> -> vector<128x128xf32>
    %13 = arith.addf %9, %12 : vector<128x128xf32>
    %c0_11 = arith.constant 0 : index
    %c0_12 = arith.constant 0 : index
    %c0_13 = arith.constant 0 : index
    %14 = vector.load %arg4[%c0_11, %c0_12, %c0_13] : memref<1x1x128xf32, #tpu.memory_space<vmem>>, vector<1x1x128xf32>
    %15 = vector.shape_cast %14 : vector<1x1x128xf32> to vector<1x128xf32>
    %16 = vector.broadcast %15 : vector<1x128xf32> to vector<128x128xf32>
    %17 = arith.addf %13, %16 : vector<128x128xf32>
    %c2_i32 = arith.constant 2 : i32
    %18 = arith.cmpi ne, %arg0, %c2_i32 : i32
    %19 = arith.extui %18 : i1 to i32
    %c0_i32_14 = arith.constant 0 : i32
    %20 = arith.cmpi ne, %19, %c0_i32_14 : i32
    scf.if %20 {
      %cst_17 = arith.constant 0.000000e+00 : f32
      %24 = vector.broadcast %cst_17 : f32 to vector<128x128xf32>
      %25 = arith.maximumf %17, %24 : vector<128x128xf32>
      %26 = arith.truncf %25 : vector<128x128xf32> to vector<128x128xbf16>
      %c0_18 = arith.constant 0 : index
      %c0_19 = arith.constant 0 : index
      %27 = vector.load %arg6[%c0_18, %c0_19] : memref<128x128xbf16, #tpu.memory_space<vmem>>, vector<128x128xbf16>
      tpu.vector_store %arg6[%c0_18, %c0_19], %26 {strides = array<i32>} : memref<128x128xbf16, #tpu.memory_space<vmem>>, vector<128x128xbf16>,
    } else {
    }
    %c2_i32_15 = arith.constant 2 : i32
    %21 = arith.cmpi eq, %arg0, %c2_i32_15 : i32
    %22 = arith.extui %21 : i1 to i32
    %c0_i32_16 = arith.constant 0 : i32
    %23 = arith.cmpi ne, %22, %c0_i32_16 : i32
    scf.if %23 {
      %24 = tpu.iota {dimensions = array<i32: 1>} : vector<128x128xi32>
      %c8_i32 = arith.constant 8 : i32
      %25 = vector.broadcast %c8_i32 : i32 to vector<128x128xi32>
      %26 = arith.cmpi slt, %24, %25 : vector<128x128xi32>
      %cst_17 = arith.constant -1.000000e+30 : f32
      %27 = vector.broadcast %cst_17 : f32 to vector<128x128xf32>
      %28 = arith.select %26, %17, %27 : vector<128x128xi1>, vector<128x128xf32>
      %cst_18 = arith.constant dense<0xFF800000> : vector<128xf32>
      %29 = vector.multi_reduction <maximumf>, %28, %cst_18 [1] : vector<128x128xf32> to vector<128xf32>
      %30 = vector.shape_cast %29 : vector<128xf32> to vector<128x1xf32>
      %31 = vector.broadcast %30 : vector<128x1xf32> to vector<128x128xf32>
      %32 = arith.subf %28, %31 : vector<128x128xf32>
      %33 = math.exp %32 : vector<128x128xf32>
      %cst_19 = arith.constant dense<0.000000e+00> : vector<128xf32>
      %34 = vector.multi_reduction <add>, %33, %cst_19 [1] : vector<128x128xf32> to vector<128xf32>
      %35 = vector.shape_cast %34 : vector<128xf32> to vector<128x1xf32>
      %36 = math.log %35 : vector<128x1xf32>
      %37 = vector.broadcast %36 : vector<128x1xf32> to vector<128x128xf32>
      %38 = arith.subf %32, %37 : vector<128x128xf32>
      %c0_20 = arith.constant 0 : index
      %c0_21 = arith.constant 0 : index
      %39 = vector.load %arg5[%c0_20, %c0_21] : memref<128x128xf32, #tpu.memory_space<vmem>>, vector<128x128xf32>
      tpu.vector_store %arg5[%c0_20, %c0_21], %38 {strides = array<i32>} : memref<128x128xf32, #tpu.memory_space<vmem>>, vector<128x128xf32>,
    } else {
    }
    return
  }
  func.func @transform_0(%arg0: i32) -> (i32, i32) {
    %c0_i32 = arith.constant 0 : i32
    %c0_i32_0 = arith.constant 0 : i32
    %c0_i32_1 = arith.constant 0 : i32
    return %c0_i32, %c0_i32_0 : i32, i32
  }
  func.func @transform_1(%arg0: i32) -> (i32, i32) {
    %c0_i32 = arith.constant 0 : i32
    %c0_i32_0 = arith.constant 0 : i32
    %c0_i32_1 = arith.constant 0 : i32
    return %c0_i32, %c0_i32_0 : i32, i32
  }
  func.func @transform_2(%arg0: i32) -> (i32, i32, i32) {
    %c0_i32 = arith.constant 0 : i32
    %c0_i32_0 = arith.constant 0 : i32
    %c0_i32_1 = arith.constant 0 : i32
    return %arg0, %c0_i32, %c0_i32_0 : i32, i32, i32
  }
  func.func @transform_3(%arg0: i32) -> (i32, i32, i32) {
    %c0_i32 = arith.constant 0 : i32
    %c0_i32_0 = arith.constant 0 : i32
    %c0_i32_1 = arith.constant 0 : i32
    return %arg0, %c0_i32, %c0_i32_0 : i32, i32, i32
  }
  func.func @transform_4(%arg0: i32) -> (i32, i32) {
    %c0_i32 = arith.constant 0 : i32
    %c0_i32_0 = arith.constant 0 : i32
    %c0_i32_1 = arith.constant 0 : i32
    return %c0_i32, %c0_i32_0 : i32, i32
  }
}

</mosaic_0001>

<bundles_post_ra>
// kernel: tpu_custom_call.1
= control target key start
LH: loop header
LB: loop body
LE: loop exit
PB: predicated region body
PF: predicated region fallthrough
CT: control target
= control target key end

     0   :  { %9 = vsyncpa [#allocation4], 0  ;;  %s2194_s0 = inlined_call_operand.hbm [shape: bf16[128,128], index: 0, kind: input, shape index: {}]   ;;  %s2195_s1 = inlined_call_operand.hbm [shape: bf16[128,128], index: 1, kind: input, shape index: {}]   ;;  %s2196_s2 = inlined_call_operand.hbm [shape: bf16[3,256,128], index: 2, kind: input, shape index: {}]   ;;  %s2197_s3 = inlined_call_operand.vmem [shape: f32[3,1,128], index: 3, kind: input, shape index: {}]   ;;  %s2198_s4 = inlined_call_operand.hbm [shape: f32[128,128], index: 4, kind: output, shape index: {}]  }
   0x1   :  { %10 = vsyncpa [#allocation7], 0 }
   0x2   :  { %11 = vsyncpa [#allocation5], 0  ;;  %s1755_s15 = smov 0   ;;  %s1757_s16 = smov 0  }
   0x3   :  { %s1759_s17 = smov 0   ;;  %s1761_s18 = smov 0  }
   0x4 LB: > { %s1774_s19 = sadd.s32 4294967295, %s1720_s18   ;;  %s1777_s20 = sadd.s32 1, %s1720_s18   ;;  %s1720_s18 = sphi %s1761_s18, %s2219_s18   ;;  %s1716_s17 = sphi %s1759_s17, %s2218_s17   ;;  %s1712_s16 = sphi %s1757_s16, %s2217_s16   ;;  %s1708_s15 = sphi %s1755_s15, %s2216_s15  }
   0x5   : > { %s63_s21 = ssub.s32 %s1720_s18, %s1777_s20  ;;  %s66_s22 = sadd.s32 1, %s1716_s17 }
   0x6   : > { %p64_p0 = scmp.eq.s32.totalorder %s63_s21, 0  ;;  %p73_p1 = scmp.ne.s32.totalorder %s1716_s17, %s1712_s16 }
   0x7   : > { %p74_p2 = scmp.eq.s32.totalorder %s1720_s18, 0  ;;  %p79_p3 = scmp.ne.s32.totalorder %s1712_s16, %s1708_s15 }
   0x8   : > { %s1787_s23 = scalar_select %p64_p0, %s1716_s17, %s66_s22  }
   0x9   : > { %p1789_p4 = por %p74_p2, %p73_p1  ;;  %p2199_p5 = scmp.eq.s32.totalorder %s1774_s19, 0 }
   0xa   : > { %p1167_p6 = scmp.ge.s32.totalorder %s1720_s18, 1  ;;  %p137_p7 = scmp.lt.s32.totalorder %s1720_s18, 4 }
   0xb   : > { %p1798_p8 = por %p2199_p5, %p79_p3  ;;  %s1722_s27 = smov [#allocation3]  }
   0xc   : > { %p1803_p10 = pnand %p1167_p6, %p137_p7  ;;  %s149_s28 = sshll.u32 %s1722_s27, 4  ;;  %s150_s28 = int_to_ptr.vmem [resolvable:$true] %s149_s28 }
   0xd   : > { %s2204_s25 = scalar_select %p1798_p8, 1, 0 }
   0xe   : > { %s2205_s26 = scalar_select %p1803_p10, 1, 0 }
   0xf   : > { %p1409_p11 = pneg %p1803_p10  ;;  %p1422_p13 = scmp.lt.s32.totalorder %s1720_s18, 3 }
  0x10   : > { %s1562_s7 = scalar_lea.hbm %s2194_s0, 1024 }
  0x11   : > { %p1811_p12 = pnand %p1409_p11, %p2199_p5  ;;  %p1818_p0 = pnand %p1422_p13, %p1789_p4 }
  0x12   : > { %p1563_p1 = scmp.ne.s32.totalorder %s2194_s0, %s1562_s7  ;;  %p1569_p4 = scmp.lt.u32.totalorder %s1562_s7, %s2194_s0 }
  0x13   : > { %s2207_s30 = scalar_select %p1818_p0, 1, 0 }
  0x14   : > { %p1564_p2 = pneg %p1811_p12 }
  0x16   : > { %p1565_p3 = pnand %p1564_p2, %p1563_p1 }
  0x18   : > { %p1566_p6 = pneg %p1565_p3 }
  0x1a   : > { %p1571_p7 = pnand %p1569_p4, %p1566_p6 }
  0x1c   : > { %1574 = shalt.err (!%p1571_p7)
}
  0x1d   : > { %s1575_s12 = scalar_lea.vmem %s150_s28, 1024  ;;  %p1583_p5 = scmp.lt.s32.totalorder %s150_s28, %s150_s28 }
  0x1e   : > { %p1576_p11 = scmp.ne.s32.totalorder %s150_s28, %s1575_s12  ;;  %p1584_p8 = scmp.lt.s32.totalorder %s1575_s12, %s1575_s12 }
  0x20   : > { %p1578_p13 = pnand %p1576_p11, %p1564_p2  ;;  %p1585_p10 = por %p1584_p8, %p1583_p5 }
  0x22   : > { %p1579_p9 = pneg %p1578_p13 }
  0x24   : > { %p1586_p0 = pnand %p1585_p10, %p1579_p9 }
  0x26   : > { %1589 = shalt.err (!%p1586_p0)
}
  0x27   : > { %s1723_s13 = smov 64   ;;  %s1724_s14 = smov 4  }
  0x28   : > { %1412 = dma.hbm_to_vmem [thread:$0]  (!%p1811_p12), %s2194_s0, 1024, %s150_s28, [#allocation4], %s1723_s13, %s1723_s13, %s1724_s14  }
  0x29   : > { %s1725_s22 = smov [#allocation6]   ;;  %s176_s27 = sand.u32 1, %s1720_s18  }
  0x2a   : > { %s162_s24 = sshll.u32 %s1725_s22, 4  ;;  %s1590_s7 = scalar_lea.hbm %s2195_s1, 1024  ;;  %s163_s24 = int_to_ptr.vmem [resolvable:$true] %s162_s24 }
  0x2b   : > { %p1591_p5 = scmp.ne.s32.totalorder %s2195_s1, %s1590_s7  ;;  %p1597_p10 = scmp.lt.u32.totalorder %s1590_s7, %s2195_s1 }
  0x2d   : > { %p1593_p8 = pnand %p1591_p5, %p1564_p2 }
  0x2f   : > { %p1594_p9 = pneg %p1593_p8 }
  0x31   : > { %p1599_p0 = pnand %p1597_p10, %p1594_p9 }
  0x33   : > { %1602 = shalt.err (!%p1599_p0)
}
  0x34   : > { %s1603_s28 = scalar_lea.vmem %s163_s24, 1024  ;;  %p1611_p4 = scmp.lt.s32.totalorder %s163_s24, %s163_s24 }
  0x35   : > { %p1604_p1 = scmp.ne.s32.totalorder %s163_s24, %s1603_s28  ;;  %p1612_p7 = scmp.lt.s32.totalorder %s1603_s28, %s1603_s28 }
  0x37   : > { %p1606_p3 = pnand %p1604_p1, %p1564_p2  ;;  %p1613_p11 = por %p1612_p7, %p1611_p4 }
  0x39   : > { %p1607_p6 = pneg %p1606_p3 }
  0x3b   : > { %p1614_p13 = pnand %p1613_p11, %p1607_p6 }
  0x3d   : > { %1617 = shalt.err (!%p1614_p13)
}
  0x3e   : > { %1415 = dma.hbm_to_vmem [thread:$0]  (!%p1811_p12), %s2195_s1, 1024, %s163_s24, [#allocation7], %s1723_s13, %s1723_s13, %s1724_s14  }
  0x3f   : > { %s178_s21 = sand.u32 1, %s1716_s17   ;;  %s1218_s22 = sshll.u32 %s1720_s18, 11 }
  0x40   : > { %s1171_s5 = sshll.u32 %s178_s21, 7  ;;  %s1876_s8 = scalar_lea.hbm %s2196_s2, %s1218_s22 }
  0x41   : > { %s180_s29 = scalar_lea.vmem [#allocation8], %s1171_s5  ;;  %s1880_s10 = scalar_lea.sflag [#allocation4], %s176_s27 }
  0x42   : > { %s187_s9 = sshll.u32 %s180_s29, 4  ;;  %s1618_s11 = scalar_lea.hbm %s1876_s8, 2048  ;;  %s1878_s9 = int_to_ptr.vmem [resolvable:$true] %s187_s9 }
  0x43   : > { %p1619_p12 = scmp.ne.s32.totalorder %s1876_s8, %s1618_s11  ;;  %p2208_p2 = scmp.ne.s32.totalorder %s2207_s30, 0 }
  0x44   : > { %s1623_s28 = scalar_lea.hbm %s2196_s2, 6144  ;;  %p1624_p10 = scmp.lt.u32.totalorder %s1876_s8, %s2196_s2 }
  0x45   : > { %p1620_p5 = pneg %p2208_p2  ;;  %p1625_p0 = scmp.lt.u32.totalorder %s1623_s28, %s1618_s11 }
  0x46   : > { %p1627_p3 = scmp.lt.u32.totalorder %s1618_s11, %s1876_s8 }
  0x47   : > { %p1621_p8 = pnand %p1620_p5, %p1619_p12  ;;  %p1626_p1 = por %p1625_p0, %p1624_p10 }
  0x49   : > { %p1622_p9 = pneg %p1621_p8  ;;  %p1628_p6 = por %p1627_p3, %p1626_p1 }
  0x4b   : > { %p1629_p4 = pnand %p1628_p6, %p1622_p9 }
  0x4d   : > { %1632 = shalt.err (!%p1629_p4)
}
  0x4e   : > { %s1633_s27 = scalar_lea.vmem %s1878_s9, 2048  ;;  %s1726_s21 = smov [#allocation8]  }
  0x4f   : > { %p1634_p7 = scmp.ne.s32.totalorder %s1878_s9, %s1633_s27  ;;  %s1638_s22 = sshll.u32 %s1726_s21, 4  ;;  %s1639_s22 = int_to_ptr.vmem [resolvable:$false] %s1638_s22 }
  0x50   : > { %s1640_s5 = scalar_lea.vmem %s1639_s22, 4096  ;;  %p1641_p12 = scmp.lt.s32.totalorder %s1878_s9, %s1639_s22 }
  0x51   : > { %p1636_p11 = pnand %p1634_p7, %p1620_p5  ;;  %p1642_p8 = scmp.lt.s32.totalorder %s1640_s5, %s1633_s27 }
  0x53   : > { %p1637_p13 = pneg %p1636_p11  ;;  %p1643_p10 = por %p1642_p8, %p1641_p12 }
  0x55   : > { %p1644_p0 = pnand %p1643_p10, %p1637_p13 }
  0x57   : > { %1647 = shalt.err (!%p1644_p0)
}
  0x58   : > { %1419 = dma.hbm_to_vmem [thread:$0]  (!%p2208_p2), %s1876_s8, 2048, %s1878_s9, %s1880_s10, %s1723_s13, %s1723_s13, %s1724_s14  }
  0x59   : > { %p2209_p5 = scmp.ne.s32.totalorder %s2205_s26, 0 }
  0x5a   : > { %p2210_p9 = scmp.eq.s32.totalorder (!%p2209_p5), %s1774_s19, 0 }
  0x5b   : > { %205 = sbr.rel (%p2209_p5) target bundleno = 995 (0x3e3), region = 36 }
  0x62   : > { %1691 = dma.done.wait (%p2210_p9), [#allocation4], 1024   ;;  %p2211_p1 = pmov %p2210_p9 }
  0x64   : > { %1693 = vsyncadd (%p2211_p1), [#allocation4], 4294966272  ;;  %p2212_p3 = pmov %p2211_p1 }
  0x65   : > { %p2213_p6 = pmov %p2211_p1 }
  0x66   : > { %1695 = dma.done.wait (%p2212_p3), [#allocation7], 1024  }
  0x67   : > { %1697 = vsyncadd (%p2213_p6), [#allocation7], 4294966272  ;;  %s215_s30 = sand.u32 1, %s1774_s19   ;;  %s217_s13 = sand.u32 1, %s1712_s16  }
  0x68   : > { %s1177_s14 = sshll.u32 %s217_s13, 7  ;;  %s216_s26 = scalar_lea.sflag [#allocation4], %s215_s30 }
  0x69   : > { %s1923_s6 = scalar_lea.vmem [#allocation8], %s1177_s14  ;;  %p2214_p2 = scmp.ne.s32.totalorder %s2204_s25, 0 }
  0x6b   : > { %1699 = dma.done.wait (%p2214_p2), %s216_s26, 2048  }
  0x6c   : > { %1701 = vsyncadd (%p2214_p2), %s216_s26, 4294965248  ;;  %p242_p4 = scmp.lt.s32.totalorder %s1774_s19, 2  ;;  %p2215_p7 = scmp.ne.s32.totalorder %s1774_s19, 0 }
  0x6d   : > { %v1466_v0 = vld [vmem:[#allocation6] sm:$0xff] (!%p2215_p7)   ;;  %v1467_v1 = vld [vmem:[#allocation6 + $0x8] sm:$0xff] (!%p2215_p7)   ;;  %v1468_v2 = vld [vmem:[#allocation6 + $0x10] sm:$0xff] (!%p2215_p7)  }
  0x6e   : > { %s1931_s7 = scalar_select %p242_p4, %s1774_s19, 2 }
  0x6f   : > { %249 = sbr.rel (%p2215_p7) target bundleno = 118 (0x76), region = 52  ;;  %314 = vst [vmem:[#allocation2] sm:$0xff] (!%p2215_p7), %v1466_v0  ;;  %315 = vst [vmem:[#allocation2 + $0x8] sm:$0xff] (!%p2215_p7), %v1467_v1  ;;  %v1469_v3 = vld [vmem:[#allocation6 + $0x18] sm:$0xff] (!%p2215_p7)   ;;  %v1470_v4 = vld [vmem:[#allocation6 + $0x20] sm:$0xff] (!%p2215_p7)  }
  0x70   : > { %s244_s9 = scalar_lea.vmem %s2197_s3, %s1931_s7  ;;  %316 = vst [vmem:[#allocation2 + $0x10] sm:$0xff] (!%p2215_p7), %v1468_v2  ;;  %317 = vst [vmem:[#allocation2 + $0x18] sm:$0xff] (!%p2215_p7), %v1469_v3  ;;  %v1471_v5 = vld [vmem:[#allocation6 + $0x28] sm:$0xff] (!%p2215_p7)   ;;  %v1472_v6 = vld [vmem:[#allocation6 + $0x30] sm:$0xff] (!%p2215_p7)  }
  0x71   : > { %318 = vst [vmem:[#allocation2 + $0x20] sm:$0xff] (!%p2215_p7), %v1470_v4  ;;  %319 = vst [vmem:[#allocation2 + $0x28] sm:$0xff] (!%p2215_p7), %v1471_v5  ;;  %v1473_v7 = vld [vmem:[#allocation6 + $0x38] sm:$0xff] (!%p2215_p7)  }
  0x72   : > { %320 = vst [vmem:[#allocation2 + $0x30] sm:$0xff] (!%p2215_p7), %v1472_v6  ;;  %321 = vst [vmem:[#allocation2 + $0x38] sm:$0xff] (!%p2215_p7), %v1473_v7 }
  0x76 PF: > { %v322_v8 = vld [vmem:[#allocation2] sm:$0xff]  ;;  %v1939_v9 = vld [vmem:[#allocation2 + $0x8] sm:$0xff]  ;;  %v1484_v16 = vld [vmem:[%s1923_s6 + $0x50] sm:$0xff]   ;;  %p1212_p11 = scmp.eq.s32.totalorder %s1774_s19, 2 }
  0x77   : > { %1267 = vmatprep.subr.bf16.mxu0 %v322_v8  ;;  %1315 = vmatprep.mubr.bf16.mxu1 %v322_v8  ;;  %v1474_v10 = vld [vmem:[#allocation3] sm:$0xff]   ;;  %v1942_v11 = vld [vmem:[#allocation2 + $0x10] sm:$0xff]  ;;  %v1946_v12 = vld [vmem:[#allocation2 + $0x18] sm:$0xff] }
  0x78   : > { %1268 = vmatpush3.bf16.msra.mxu0 %v322_v8  ;;  %1283 = vmatprep.mubr.bf16.mxu0 %v1474_v10  ;;  %v1949_v13 = vld [vmem:[#allocation2 + $0x20] sm:$0xff]  ;;  %v1483_v15 = vld [vmem:[%s1923_s6 + $0x48] sm:$0xff]   ;;  %v1485_v18 = vld [vmem:[%s1923_s6 + $0x58] sm:$0xff]  }
  0x79   : > { %1269 = vmatprep.subr.bf16.mxu0 %v1939_v9  ;;  %v1482_v14 = vld [vmem:[%s1923_s6 + $0x40] sm:$0xff]   ;;  %v1957_v17 = vld [vmem:[#allocation2 + $0x28] sm:$0xff]  ;;  %v1962_v19 = vld [vmem:[#allocation2 + $0x30] sm:$0xff] }
  0x7a   : > { %1299 = vmatprep.subr.bf16.mxu1 %v1482_v14  ;;  %v1486_v20 = vld [vmem:[%s1923_s6 + $0x60] sm:$0xff]   ;;  %v1967_v21 = vld [vmem:[#allocation2 + $0x38] sm:$0xff]  ;;  %v1488_v23 = vld [vmem:[%s1923_s6 + $0x68] sm:$0xff]  }
  0x7b   : > { %1300 = vmatpush3.bf16.msra.mxu1 %v1482_v14  ;;  %v1487_v22 = vld [vmem:[%s1923_s6] sm:$0xff]   ;;  %v1475_v24 = vld [vmem:[#allocation3 + $0x8] sm:$0xff]   ;;  %v1476_v25 = vld [vmem:[#allocation3 + $0x10] sm:$0xff]  }
  0x7c   : > { %1270 = vmatpush3.bf16.msra.mxu0 %v1939_v9  ;;  %1301 = vmatprep.subr.bf16.mxu1 %v1483_v15  ;;  %v1489_v26 = vld [vmem:[%s1923_s6 + $0x8] sm:$0xff]   ;;  %v1490_v27 = vld [vmem:[%s1923_s6 + $0x70] sm:$0xff]   ;;  %v1492_v29 = vld [vmem:[%s1923_s6 + $0x78] sm:$0xff]  }
  0x7d   : > { %1271 = vmatprep.subr.bf16.mxu0 %v1942_v11  ;;  %v1491_v28 = vld [vmem:[%s1923_s6 + $0x10] sm:$0xff]   ;;  %v1477_v30 = vld [vmem:[#allocation3 + $0x18] sm:$0xff]   ;;  %v1478_v31 = vld [vmem:[#allocation3 + $0x20] sm:$0xff]  }
  0x7e   : > { %v1493_v32 = vld [vmem:[%s1923_s6 + $0x18] sm:$0xff]   ;;  %v1494_v33 = vld [vmem:[%s1923_s6 + $0x20] sm:$0xff]   ;;  %v1479_v34 = vld [vmem:[#allocation3 + $0x28] sm:$0xff]  }
  0x7f   : > { %1302 = vmatpush3.bf16.msra.mxu1 %v1483_v15  ;;  %v1480_v35 = vld [vmem:[#allocation3 + $0x30] sm:$0xff]   ;;  %v1495_v36 = vld [vmem:[%s1923_s6 + $0x28] sm:$0xff]   ;;  %v1481_v38 = vld [vmem:[#allocation3 + $0x38] sm:$0xff]  }
  0x80   : > { %1272 = vmatpush3.bf16.msra.mxu0 %v1942_v11  ;;  %1303 = vmatprep.subr.bf16.mxu1 %v1484_v16  ;;  %v1496_v37 = vld [vmem:[%s1923_s6 + $0x30] sm:$0xff]   ;;  %v1497_v39 = vld [vmem:[%s1923_s6 + $0x38] sm:$0xff]  }
  0x81   : > { %1273 = vmatprep.subr.bf16.mxu0 %v1946_v12 }
  0x83   : > { %1304 = vmatpush3.bf16.msra.mxu1 %v1484_v16 }
  0x84   : > { %1274 = vmatpush3.bf16.msra.mxu0 %v1946_v12  ;;  %1305 = vmatprep.subr.bf16.mxu1 %v1485_v18 }
  0x85   : > { %1275 = vmatprep.subr.bf16.mxu0 %v1949_v13 }
  0x87   : > { %1306 = vmatpush3.bf16.msra.mxu1 %v1485_v18 }
  0x88   : > { %1276 = vmatpush3.bf16.msra.mxu0 %v1949_v13  ;;  %1307 = vmatprep.subr.bf16.mxu1 %v1486_v20 }
  0x89   : > { %1277 = vmatprep.subr.bf16.mxu0 %v1957_v17 }
  0x8b   : > { %1308 = vmatpush3.bf16.msra.mxu1 %v1486_v20 }
  0x8c   : > { %1278 = vmatpush3.bf16.msra.mxu0 %v1957_v17  ;;  %1309 = vmatprep.subr.bf16.mxu1 %v1488_v23 }
  0x8d   : > { %1279 = vmatprep.subr.bf16.mxu0 %v1962_v19 }
  0x8f   : > { %1310 = vmatpush3.bf16.msra.mxu1 %v1488_v23 }
  0x90   : > { %1280 = vmatpush3.bf16.msra.mxu0 %v1962_v19  ;;  %1311 = vmatprep.subr.bf16.mxu1 %v1490_v27 }
  0x91   : > { %1281 = vmatprep.subr.bf16.mxu0 %v1967_v21 }
  0x93   : > { %1312 = vmatpush3.bf16.msra.mxu1 %v1490_v27 }
  0x94   : > { %1282 = vmatpush3.bf16.msra.mxu0 %v1967_v21  ;;  %1313 = vmatprep.subr.bf16.mxu1 %v1492_v29 }
  0x95   : > { %1331 = vmatprep.subr.bf16.mxu0 %v1487_v22 }
  0x97   : > { %1284 = vmatmul.mubr.bf16.vlgmr.msra.gmra.mrb[0].mxu0 %v1475_v24  ;;  %1314 = vmatpush3.bf16.msra.mxu1 %v1492_v29 }
  0x98   : > { %1287 = vmatprep.mubr.bf16.mxu0 %v1476_v25  ;;  %1332 = vmatpush3.bf16.msra.mxu0 %v1487_v22 }
  0x99   : > { %1333 = vmatprep.subr.bf16.mxu0 %v1489_v26  ;;  %1363 = vmatprep.subr.bf16.mxu1 %v1487_v22 }
  0x9a   : > { %1316 = vmatmul.mubr.bf16.vlgmr.msra.gmra.mrb[0].mxu1 %v1939_v9  ;;  %v1211_v9 = vld [vmem:[%s244_s9] ss:$0 sm:$0xff] }
  0x9b   : > { %1371 = vmatpush3.bf16.msra.mxu1 %v1487_v22  ;;  %1319 = vmatprep.mubr.bf16.mxu1 %v1942_v11 }
  0x9c   : > { %1334 = vmatpush3.bf16.msra.mxu0 %v1489_v26  ;;  %1364 = vmatprep.subr.bf16.mxu1 %v1489_v26 }
  0x9d   : > { %1335 = vmatprep.subr.bf16.mxu0 %v1491_v28 }
  0x9f   : > { %1288 = vmatmul.mubr.bf16.gmra.mrb[4].mxu0 %v1477_v30  ;;  %1372 = vmatpush3.bf16.msra.mxu1 %v1489_v26 }
  0xa0   : > { %1291 = vmatprep.mubr.bf16.mxu0 %v1478_v31  ;;  %1336 = vmatpush3.bf16.msra.mxu0 %v1491_v28 }
  0xa1   : > { %1337 = vmatprep.subr.bf16.mxu0 %v1493_v32  ;;  %1365 = vmatprep.subr.bf16.mxu1 %v1491_v28 }
  0xa2   : > { %1320 = vmatmul.mubr.bf16.gmra.mrb[4].mxu1 %v1946_v12 }
  0xa3   : > { %1373 = vmatpush3.bf16.msra.mxu1 %v1491_v28  ;;  %1323 = vmatprep.mubr.bf16.mxu1 %v1949_v13 }
  0xa4   : > { %1338 = vmatpush3.bf16.msra.mxu0 %v1493_v32  ;;  %1366 = vmatprep.subr.bf16.mxu1 %v1493_v32 }
  0xa5   : > { %1339 = vmatprep.subr.bf16.mxu0 %v1494_v33 }
  0xa7   : > { %1292 = vmatmul.mubr.bf16.gmra.mrb[8].mxu0 %v1479_v34  ;;  %1374 = vmatpush3.bf16.msra.mxu1 %v1493_v32 }
  0xa8   : > { %1295 = vmatprep.mubr.bf16.mxu0 %v1480_v35  ;;  %1340 = vmatpush3.bf16.msra.mxu0 %v1494_v33 }
  0xa9   : > { %1341 = vmatprep.subr.bf16.mxu0 %v1495_v36  ;;  %1367 = vmatprep.subr.bf16.mxu1 %v1494_v33 }
  0xaa   : > { %1324 = vmatmul.mubr.bf16.gmra.mrb[8].mxu1 %v1957_v17 }
  0xab   : > { %1375 = vmatpush3.bf16.msra.mxu1 %v1494_v33  ;;  %1327 = vmatprep.mubr.bf16.mxu1 %v1962_v19 }
  0xac   : > { %1342 = vmatpush3.bf16.msra.mxu0 %v1495_v36  ;;  %1368 = vmatprep.subr.bf16.mxu1 %v1495_v36 }
  0xad   : > { %1343 = vmatprep.subr.bf16.mxu0 %v1496_v37 }
  0xaf   : > { %1296 = vmatmul.mubr.bf16.gmra.mrb[12].mxu0 %v1481_v38  ;;  %1376 = vmatpush3.bf16.msra.mxu1 %v1495_v36 }
  0xb0   : > { %1344 = vmatpush3.bf16.msra.mxu0 %v1496_v37  ;;  %1369 = vmatprep.subr.bf16.mxu1 %v1496_v37 }
  0xb1   : > { %1345 = vmatprep.subr.bf16.mxu0 %v1497_v39 }
  0xb2   : > { %1328 = vmatmul.mubr.bf16.gmra.mrb[12].mxu1 %v1967_v21 }
  0xb3   : > { %1377 = vmatpush3.bf16.msra.mxu1 %v1496_v37 }
  0xb4   : > { %1370 = vmatprep.subr.bf16.mxu1 %v1497_v39  ;;  %1346 = vmatpush3.bf16.msra.mxu0 %v1497_v39 }
  0xb7   : > { %1378 = vmatpush3.bf16.msra.mxu1 %v1497_v39 }
 0x16a   : > { %v1285_v40 = vpop.f32.mrb[0].mxu0 }
 0x16b   : > { %v428_v41 = vpop.f32.mrb[1].mxu0 }
 0x16c   : > { %v1286_v42 = vpop.f32.mrb[2].mxu0 }
 0x16d   : > { %v492_v43 = vpack.c.bf16 %v1286_v42, %v1285_v40  ;;  %v431_v44 = vpop.f32.mrb[3].mxu0  ;;  %v1317_v52 = vpop.f32.mrb[0].mxu1 }
 0x16e   : > { %v491_v45 = vpack.c.bf16 %v431_v44, %v428_v41  ;;  %v613_v53 = vpop.f32.mrb[1].mxu1 }
 0x16f   : > { %v1318_v54 = vpop.f32.mrb[2].mxu1 }
 0x170   : > { %1347 = vmatprep.mubr.bf16.mxu0 %v491_v45  ;;  %v616_v56 = vpop.f32.mrb[3].mxu1 }
 0x171   : > { %1348 = vmatmul.mubr.bf16.vlgmr.msra.gmra.mrb[16].mxu0 %v492_v43 }
 0x172   : > { %v1289_v46 = vpop.f32.mrb[4].mxu0 }
 0x173   : > { %v444_v47 = vpop.f32.mrb[5].mxu0 }
 0x174   : > { %v1290_v48 = vpop.f32.mrb[6].mxu0 }
 0x175   : > { %v494_v49 = vpack.c.bf16 %v1290_v48, %v1289_v46  ;;  %v447_v50 = vpop.f32.mrb[7].mxu0  ;;  %v1321_v62 = vpop.f32.mrb[4].mxu1 }
 0x176   : > { %v493_v51 = vpack.c.bf16 %v447_v50, %v444_v47  ;;  %v629_v63 = vpop.f32.mrb[5].mxu1 }
 0x177   : > { %v1322_v0 = vpop.f32.mrb[6].mxu1 }
 0x178   : > { %1351 = vmatprep.mubr.bf16.mxu0 %v493_v51  ;;  %v632_v2 = vpop.f32.mrb[7].mxu1 }
 0x179   : > { %1352 = vmatmul.mubr.bf16.gmra.mrb[20].mxu0 %v494_v49 }
 0x17a   : > { %v1293_v55 = vpop.f32.mrb[8].mxu0 }
 0x17b   : > { %v460_v57 = vpop.f32.mrb[9].mxu0 }
 0x17c   : > { %v1294_v58 = vpop.f32.mrb[10].mxu0 }
 0x17d   : > { %v496_v59 = vpack.c.bf16 %v1294_v58, %v1293_v55  ;;  %v463_v60 = vpop.f32.mrb[11].mxu0 }
 0x17e   : > { %v495_v61 = vpack.c.bf16 %v463_v60, %v460_v57 }
 0x180   : > { %1355 = vmatprep.mubr.bf16.mxu1 %v495_v61 }
 0x181   : > { %1356 = vmatmul.mubr.bf16.vlgmr.msra.gmra.mrb[8].mxu1 %v496_v59 }
 0x182   : > { %v1297_v1 = vpop.f32.mrb[12].mxu0 }
 0x183   : > { %v476_v3 = vpop.f32.mrb[13].mxu0 }
 0x184   : > { %v1298_v4 = vpop.f32.mrb[14].mxu0 }
 0x185   : > { %v498_v5 = vpack.c.bf16 %v1298_v4, %v1297_v1  ;;  %v479_v6 = vpop.f32.mrb[15].mxu0 }
 0x186   : > { %v497_v7 = vpack.c.bf16 %v479_v6, %v476_v3 }
 0x188   : > { %1359 = vmatprep.mubr.bf16.mxu1 %v497_v7 }
 0x189   : > { %1360 = vmatmul.mubr.bf16.gmra.mrb[12].mxu1 %v498_v5 }
 0x244   : > { %v1349_v8 = vpop.f32.mrb[16].mxu0 }
 0x245   : > { %v767_v10 = vadd.f32 %v1349_v8, %v1317_v52  ;;  %v758_v11 = vpop.f32.mrb[17].mxu0 }
 0x246   : > { %v759_v12 = vadd.f32 %v758_v11, %v613_v53  ;;  %v1350_v13 = vpop.f32.mrb[18].mxu0 }
 0x247   : > { %v1995_v14 = vadd.f32 %v1211_v9, %v767_v10  ;;  %v770_v15 = vadd.f32 %v1350_v13, %v1318_v54  ;;  %v761_v16 = vpop.f32.mrb[19].mxu0 }
 0x248   : > { %v1997_v17 = vadd.f32 %v1211_v9, %v759_v12  ;;  %v762_v18 = vadd.f32 %v761_v16, %v616_v56 }
 0x249   : > { %v1999_v19 = vadd.f32 %v1211_v9, %v770_v15  ;;  %v850_v51 = vmax.f32 (!%p1212_p11), %v1995_v14, 0.0 }
 0x24a   : > { %v2001_v20 = vadd.f32 %v1211_v9, %v762_v18  ;;  %v848_v49 = vmax.f32 (!%p1212_p11), %v1997_v17, 0.0 }
 0x24b   : > { %v851_v52 = vmax.f32 (!%p1212_p11), %v1999_v19, 0.0 }
 0x24c   : > { %v1353_v21 = vpop.f32.mrb[20].mxu0  ;;  %v849_v50 = vmax.f32 (!%p1212_p11), %v2001_v20, 0.0 }
 0x24d   : > { %v783_v22 = vadd.f32 %v1353_v21, %v1321_v62  ;;  %v774_v23 = vpop.f32.mrb[21].mxu0  ;;  %v865_v58 = vpack.c.bf16 (!%p1212_p11), %v851_v52, %v850_v51 }
 0x24e   : > { %v775_v24 = vadd.f32 %v774_v23, %v629_v63  ;;  %v1354_v25 = vpop.f32.mrb[22].mxu0  ;;  %v864_v57 = vpack.c.bf16 (!%p1212_p11), %v849_v50, %v848_v49 }
 0x24f   : > { %v2003_v26 = vadd.f32 %v1211_v9, %v783_v22  ;;  %v786_v27 = vadd.f32 %v1354_v25, %v1322_v0  ;;  %v777_v28 = vpop.f32.mrb[23].mxu0  ;;  %873 = vst [vmem:[#allocation2 + $0x8] sm:$0xff] (!%p1212_p11), %v865_v58 }
 0x250   : > { %v2005_v29 = vadd.f32 %v1211_v9, %v775_v24  ;;  %v778_v30 = vadd.f32 %v777_v28, %v632_v2  ;;  %872 = vst [vmem:[#allocation2] sm:$0xff] (!%p1212_p11), %v864_v57 }
 0x251   : > { %v2007_v31 = vadd.f32 %v1211_v9, %v786_v27  ;;  %v854_v55 = vmax.f32 (!%p1212_p11), %v2003_v26, 0.0 }
 0x252   : > { %v2009_v32 = vadd.f32 %v1211_v9, %v778_v30  ;;  %v852_v53 = vmax.f32 (!%p1212_p11), %v2005_v29, 0.0 }
 0x253   : > { %v855_v56 = vmax.f32 (!%p1212_p11), %v2007_v31, 0.0 }
 0x254   : > { %v1357_v33 = vpop.f32.mrb[8].mxu1  ;;  %v853_v54 = vmax.f32 (!%p1212_p11), %v2009_v32, 0.0 }
 0x255   : > { %v2011_v34 = vadd.f32 %v1357_v33, %v1211_v9  ;;  %v790_v35 = vpop.f32.mrb[9].mxu1  ;;  %v867_v62 = vpack.c.bf16 (!%p1212_p11), %v855_v56, %v854_v55 }
 0x256   : > { %v2013_v36 = vadd.f32 %v1211_v9, %v790_v35  ;;  %v1358_v37 = vpop.f32.mrb[10].mxu1  ;;  %v866_v61 = vpack.c.bf16 (!%p1212_p11), %v853_v54, %v852_v53 }
 0x257   : > { %v2015_v38 = vadd.f32 %v1358_v37, %v1211_v9  ;;  %v793_v39 = vpop.f32.mrb[11].mxu1  ;;  %v858_v63 = vmax.f32 (!%p1212_p11), %v2011_v34, 0.0  ;;  %875 = vst [vmem:[#allocation2 + $0x18] sm:$0xff] (!%p1212_p11), %v867_v62 }
 0x258   : > { %v2017_v40 = vadd.f32 %v1211_v9, %v793_v39  ;;  %v856_v59 = vmax.f32 (!%p1212_p11), %v2013_v36, 0.0  ;;  %874 = vst [vmem:[#allocation2 + $0x10] sm:$0xff] (!%p1212_p11), %v866_v61 }
 0x259   : > { %v859_v0 = vmax.f32 (!%p1212_p11), %v2015_v38, 0.0 }
 0x25a   : > { %847 = sbr.rel (%p1212_p11) target bundleno = 615 (0x267), region = 56  ;;  %v857_v60 = vmax.f32 (!%p1212_p11), %v2017_v40, 0.0 }
 0x25b   : > { %v869_v5 = vpack.c.bf16 (!%p1212_p11), %v859_v0, %v858_v63 }
 0x25c   : > { %v1361_v41 = vpop.f32.mrb[12].mxu1  ;;  %v868_v1 = vpack.c.bf16 (!%p1212_p11), %v857_v60, %v856_v59 }
 0x25d   : > { %v2019_v42 = vadd.f32 %v1361_v41, %v1211_v9  ;;  %v806_v43 = vpop.f32.mrb[13].mxu1  ;;  %877 = vst [vmem:[#allocation2 + $0x28] sm:$0xff] (!%p1212_p11), %v869_v5 }
 0x25e   : > { %v2021_v44 = vadd.f32 %v1211_v9, %v806_v43  ;;  %v1362_v45 = vpop.f32.mrb[14].mxu1  ;;  %876 = vst [vmem:[#allocation2 + $0x20] sm:$0xff] (!%p1212_p11), %v868_v1 }
 0x25f   : > { %v2023_v46 = vadd.f32 %v1362_v45, %v1211_v9  ;;  %v809_v47 = vpop.f32.mrb[15].mxu1  ;;  %v862_v4 = vmax.f32 (!%p1212_p11), %v2019_v42, 0.0 }
 0x260   : > { %v2025_v48 = vadd.f32 %v1211_v9, %v809_v47  ;;  %v860_v2 = vmax.f32 (!%p1212_p11), %v2021_v44, 0.0 }
 0x261   : > { %v863_v6 = vmax.f32 %v2023_v46, 0.0 }
 0x262   : > { %v861_v3 = vmax.f32 %v2025_v48, 0.0 }
 0x263   : > { %v871_v8 = vpack.c.bf16 %v863_v6, %v862_v4 }
 0x264   : > { %v870_v7 = vpack.c.bf16 %v861_v3, %v860_v2 }
 0x265   : > { %879 = vst [vmem:[#allocation2 + $0x38] sm:$0xff] %v871_v8 }
 0x266   : > { %878 = vst [vmem:[#allocation2 + $0x30] sm:$0xff] %v870_v7 }
 0x267 PF: > { %p1213_p13 = scmp.ne.s32.totalorder %s1774_s19, 2 }
 0x268   : > { %v884_v9 = vlaneseq (!%p1213_p13) }
 0x269   : > { %883 = sbr.rel (%p1213_p13) target bundleno = 969 (0x3c9), region = 60 }
 0x26a   : > { %v885_v10 = vand.u32 (!%p1213_p13), 127, %v884_v9 }
 0x26c   : > { %vm886_vm0 = vcmp.lt.s32.totalorder (!%p1213_p13), %v885_v10, 8 }
 0x26d   : > { %v887_v11 = vsel (!%p1213_p13), %vm886_vm0, %v1997_v17, -1e+30  ;;  %v889_v12 = vsel (!%p1213_p13), %vm886_vm0, %v1995_v14, -1e+30  ;;  %v888_v13 = vsel (!%p1213_p13), %vm886_vm0, %v2001_v20, -1e+30 }
 0x26e   : > { %903 = vmax.xlane.f32.xlu0 (!%p1213_p13), %v887_v11  ;;  %907 = vmax.xlane.f32.xlu1 (!%p1213_p13), %v889_v12  ;;  %v890_v15 = vsel (!%p1213_p13), %vm886_vm0, %v1999_v19, -1e+30  ;;  %v891_v16 = vsel (!%p1213_p13), %vm886_vm0, %v2005_v29, -1e+30  ;;  %v892_v18 = vsel (!%p1213_p13), %vm886_vm0, %v2009_v32, -1e+30 }
 0x26f   : > { %v893_v14 = vsel (!%p1213_p13), %vm886_vm0, %v2003_v26, -1e+30  ;;  %v894_v17 = vsel (!%p1213_p13), %vm886_vm0, %v2007_v31, -1e+30  ;;  %v895_v19 = vsel (!%p1213_p13), %vm886_vm0, %v2013_v36, -1e+30 }
 0x270   : > { %v896_v20 = vsel %vm886_vm0, %v2017_v40, -1e+30  ;;  %v897_v21 = vsel %vm886_vm0, %v2011_v34, -1e+30  ;;  %v898_v22 = vsel %vm886_vm0, %v2015_v38, -1e+30 }
 0x271   : > { %v2073_v23 = vsel %vm886_vm0, %v2021_v44, -1e+30  ;;  %v2077_v24 = vsel %vm886_vm0, %v2025_v48, -1e+30  ;;  %v2083_v25 = vsel %vm886_vm0, %v2019_v42, -1e+30 }
 0x272   : > { %905 = vmax.xlane.f32.xlu0 %v888_v13  ;;  %909 = vmax.xlane.f32.xlu1 %v890_v15  ;;  %v2087_v26 = vsel %vm886_vm0, %v2023_v46, -1e+30 }
 0x276   : > { %911 = vmax.xlane.f32.xlu0 %v891_v16  ;;  %913 = vmax.xlane.f32.xlu1 %v892_v18 }
 0x27a   : > { %915 = vmax.xlane.f32.xlu0 %v893_v14  ;;  %917 = vmax.xlane.f32.xlu1 %v894_v17 }
 0x27e   : > { %919 = vmax.xlane.f32.xlu0 %v895_v19  ;;  %921 = vmax.xlane.f32.xlu1 %v896_v20 }
 0x282   : > { %923 = vmax.xlane.f32.xlu0 %v897_v21  ;;  %925 = vmax.xlane.f32.xlu1 %v898_v22 }
 0x286   : > { %927 = vmax.xlane.f32.xlu0 %v2073_v23  ;;  %929 = vmax.xlane.f32.xlu1 %v2077_v24 }
 0x28a   : > { %931 = vmax.xlane.f32.xlu0 %v2083_v25  ;;  %933 = vmax.xlane.f32.xlu1 %v2087_v26 }
 0x2fb   : > { %v904_v27 = vpop.xlane.xlu0 %903  ;;  %v908_v28 = vpop.xlane.xlu1 %907 }
 0x2fc   : > { %v2091_v29 = vsub.f32 %v887_v11, %v904_v27  ;;  %v2093_v30 = vsub.f32 %v889_v12, %v908_v28 }
 0x2fe   : > { %v951_v31 = vmul.f32 1.442695, %v2091_v29  ;;  %v955_v32 = vmul.f32 1.442695, %v2093_v30 }
 0x2ff   : > { %v906_v33 = vpop.xlane.xlu0 %905  ;;  %v910_v34 = vpop.xlane.xlu1 %909 }
 0x300   : > { %1498 = vpow2.f32 %v951_v31  ;;  %v2097_v35 = vsub.f32 %v888_v13, %v906_v33  ;;  %v2099_v36 = vsub.f32 %v890_v15, %v910_v34 }
 0x301   : > { %1500 = vpow2.f32 %v955_v32 }
 0x302   : > { %v953_v37 = vmul.f32 1.442695, %v2097_v35  ;;  %v957_v38 = vmul.f32 1.442695, %v2099_v36 }
 0x303   : > { %v912_v39 = vpop.xlane.xlu0 %911  ;;  %v914_v40 = vpop.xlane.xlu1 %913 }
 0x304   : > { %1502 = vpow2.f32 %v953_v37  ;;  %v2103_v41 = vsub.f32 %v891_v16, %v912_v39  ;;  %v2105_v42 = vsub.f32 %v892_v18, %v914_v40 }
 0x305   : > { %1504 = vpow2.f32 %v957_v38 }
 0x306   : > { %v959_v43 = vmul.f32 1.442695, %v2103_v41  ;;  %v961_v44 = vmul.f32 1.442695, %v2105_v42 }
 0x307   : > { %v916_v45 = vpop.xlane.xlu0 %915  ;;  %v918_v46 = vpop.xlane.xlu1 %917 }
 0x308   : > { %1506 = vpow2.f32 %v959_v43  ;;  %v2109_v47 = vsub.f32 %v893_v14, %v916_v45  ;;  %v2111_v48 = vsub.f32 %v894_v17, %v918_v46 }
 0x309   : > { %1508 = vpow2.f32 %v961_v44 }
 0x30a   : > { %v1499_v49 = vpop.eup %1498  ;;  %v963_v50 = vmul.f32 1.442695, %v2109_v47  ;;  %v965_v51 = vmul.f32 1.442695, %v2111_v48 }
 0x30b   : > { %983 = vadd.xlane.f32.xlu0 %v1499_v49  ;;  %v920_v52 = vpop.xlane.xlu0 %919  ;;  %v922_v53 = vpop.xlane.xlu1 %921 }
 0x30c   : > { %v1501_v54 = vpop.eup %1500  ;;  %1510 = vpow2.f32 %v963_v50  ;;  %v2115_v55 = vsub.f32 %v895_v19, %v920_v52  ;;  %v2117_v56 = vsub.f32 %v896_v20, %v922_v53 }
 0x30d   : > { %1512 = vpow2.f32 %v965_v51 }
 0x30e   : > { %v1503_v57 = vpop.eup %1502  ;;  %v967_v58 = vmul.f32 1.442695, %v2115_v55  ;;  %v969_v59 = vmul.f32 1.442695, %v2117_v56 }
 0x30f   : > { %987 = vadd.xlane.f32.xlu0 %v1501_v54  ;;  %985 = vadd.xlane.f32.xlu1 %v1503_v57  ;;  %v924_v60 = vpop.xlane.xlu0 %923  ;;  %v926_v61 = vpop.xlane.xlu1 %925 }
 0x310   : > { %v1505_v62 = vpop.eup %1504  ;;  %1514 = vpow2.f32 %v967_v58  ;;  %v2121_v63 = vsub.f32 %v897_v21, %v924_v60  ;;  %v2123_v0 = vsub.f32 %v898_v22, %v926_v61 }
 0x311   : > { %1516 = vpow2.f32 %v969_v59 }
 0x312   : > { %v1507_v1 = vpop.eup %1506  ;;  %v971_v2 = vmul.f32 1.442695, %v2121_v63  ;;  %v973_v3 = vmul.f32 1.442695, %v2123_v0 }
 0x313   : > { %989 = vadd.xlane.f32.xlu1 %v1505_v62  ;;  %991 = vadd.xlane.f32.xlu0 %v1507_v1  ;;  %v928_v4 = vpop.xlane.xlu0 %927  ;;  %v930_v5 = vpop.xlane.xlu1 %929 }
 0x314   : > { %v1509_v6 = vpop.eup %1508  ;;  %1518 = vpow2.f32 %v971_v2  ;;  %v2128_v7 = vsub.f32 %v2073_v23, %v928_v4  ;;  %v2131_v8 = vsub.f32 %v2077_v24, %v930_v5 }
 0x315   : > { %1520 = vpow2.f32 %v973_v3 }
 0x316   : > { %v1511_v9 = vpop.eup %1510  ;;  %v975_v10 = vmul.f32 1.442695, %v2128_v7  ;;  %v977_v11 = vmul.f32 1.442695, %v2131_v8 }
 0x317   : > { %993 = vadd.xlane.f32.xlu1 %v1509_v6  ;;  %995 = vadd.xlane.f32.xlu0 %v1511_v9  ;;  %v932_v12 = vpop.xlane.xlu0 %931  ;;  %v934_v13 = vpop.xlane.xlu1 %933 }
 0x318   : > { %v1513_v15 = vpop.eup %1512  ;;  %1522 = vpow2.f32 %v975_v10  ;;  %v2136_v16 = vsub.f32 %v2083_v25, %v932_v12  ;;  %v2139_v18 = vsub.f32 %v2087_v26, %v934_v13 }
 0x319   : > { %1524 = vpow2.f32 %v977_v11 }
 0x31a   : > { %v1515_v14 = vpop.eup %1514  ;;  %v979_v17 = vmul.f32 1.442695, %v2136_v16  ;;  %v981_v19 = vmul.f32 1.442695, %v2139_v18 }
 0x31b   : > { %997 = vadd.xlane.f32.xlu1 %v1513_v15  ;;  %999 = vadd.xlane.f32.xlu0 %v1515_v14  ;;  %v1517_v20 = vpop.eup %1516 }
 0x31c   : > { %1526 = vpow2.f32 %v979_v17 }
 0x31d   : > { %1528 = vpow2.f32 %v981_v19 }
 0x31e   : > { %v1519_v21 = vpop.eup %1518 }
 0x31f   : > { %1001 = vadd.xlane.f32.xlu1 %v1517_v20  ;;  %1003 = vadd.xlane.f32.xlu0 %v1519_v21  ;;  %v1521_v22 = vpop.eup %1520 }
 0x322   : > { %v1523_v23 = vpop.eup %1522 }
 0x323   : > { %1005 = vadd.xlane.f32.xlu1 %v1521_v22  ;;  %1007 = vadd.xlane.f32.xlu0 %v1523_v23  ;;  %v1525_v24 = vpop.eup %1524 }
 0x326   : > { %v1527_v25 = vpop.eup %1526 }
 0x327   : > { %1009 = vadd.xlane.f32.xlu1 %v1525_v24  ;;  %1011 = vadd.xlane.f32.xlu0 %v1527_v25  ;;  %v1529_v26 = vpop.eup %1528 }
 0x32b   : > { %1013 = vadd.xlane.f32.xlu1 %v1529_v26 }
 0x398   : > { %v984_v27 = vpop.xlane.xlu0 %983 }
 0x399   : > { %1530 = vlog2.f32 %v984_v27 }
 0x39c   : > { %v986_v28 = vpop.xlane.xlu1 %985  ;;  %v988_v31 = vpop.xlane.xlu0 %987 }
 0x39d   : > { %1532 = vlog2.f32 %v986_v28 }
 0x39e   : > { %1534 = vlog2.f32 %v988_v31 }
 0x3a0   : > { %v990_v32 = vpop.xlane.xlu1 %989  ;;  %v992_v33 = vpop.xlane.xlu0 %991 }
 0x3a1   : > { %1536 = vlog2.f32 %v990_v32 }
 0x3a2   : > { %1538 = vlog2.f32 %v992_v33 }
 0x3a3   : > { %v1531_v34 = vpop.eup %1530 }
 0x3a4   : > { %v1016_v37 = vmul.f32 0.6931472, %v1531_v34  ;;  %v994_v38 = vpop.xlane.xlu1 %993  ;;  %v996_v39 = vpop.xlane.xlu0 %995 }
 0x3a5   : > { %1540 = vlog2.f32 %v994_v38 }
 0x3a6   : > { %v1047_v40 = vsub.f32 %v2091_v29, %v1016_v37  ;;  %1542 = vlog2.f32 %v996_v39 }
 0x3a7   : > { %v1533_v43 = vpop.eup %1532 }
 0x3a8   : > { %v1535_v44 = vpop.eup %1534  ;;  %1063 = vst [vmem:[#allocation9] sm:$0xff] %v1047_v40  ;;  %v1018_v45 = vmul.f32 0.6931472, %v1533_v43  ;;  %v998_v46 = vpop.xlane.xlu1 %997 }
 0x3a9   : > { %v1000_v49 = vpop.xlane.xlu0 %999  ;;  %v1020_v50 = vmul.f32 0.6931472, %v1535_v44  ;;  %1544 = vlog2.f32 %v998_v46 }
 0x3aa   : > { %v1048_v51 = vsub.f32 %v2097_v35, %v1018_v45  ;;  %1546 = vlog2.f32 %v1000_v49 }
 0x3ab   : > { %v1537_v52 = vpop.eup %1536  ;;  %v1049_v53 = vsub.f32 %v2093_v30, %v1020_v50 }
 0x3ac   : > { %v1539_v54 = vpop.eup %1538  ;;  %1064 = vst [vmem:[#allocation9 + $0x8] sm:$0xff] %v1048_v51  ;;  %v1022_v57 = vmul.f32 0.6931472, %v1537_v52  ;;  %v1002_v58 = vpop.xlane.xlu1 %1001 }
 0x3ad   : > { %v1004_v29 = vpop.xlane.xlu0 %1003  ;;  %1065 = vst [vmem:[#allocation9 + $0x10] sm:$0xff] %v1049_v53  ;;  %v1024_v59 = vmul.f32 0.6931472, %v1539_v54  ;;  %1548 = vlog2.f32 %v1002_v58 }
 0x3ae   : > { %v1050_v60 = vsub.f32 %v2099_v36, %v1022_v57  ;;  %1550 = vlog2.f32 %v1004_v29 }
 0x3af   : > { %v1541_v61 = vpop.eup %1540  ;;  %v1051_v62 = vsub.f32 %v2103_v41, %v1024_v59 }
 0x3b0   : > { %v1543_v1 = vpop.eup %1542  ;;  %1066 = vst [vmem:[#allocation9 + $0x18] sm:$0xff] %v1050_v60  ;;  %v1026_v35 = vmul.f32 0.6931472, %v1541_v61  ;;  %v1006_v2 = vpop.xlane.xlu1 %1005 }
 0x3b1   : > { %v1008_v3 = vpop.xlane.xlu0 %1007  ;;  %1067 = vst [vmem:[#allocation9 + $0x20] sm:$0xff] %v1051_v62  ;;  %v1028_v30 = vmul.f32 0.6931472, %v1543_v1  ;;  %1552 = vlog2.f32 %v1006_v2 }
 0x3b2   : > { %v1052_v4 = vsub.f32 %v2105_v42, %v1026_v35  ;;  %1554 = vlog2.f32 %v1008_v3 }
 0x3b3   : > { %v1545_v5 = vpop.eup %1544  ;;  %v1053_v6 = vsub.f32 %v2109_v47, %v1028_v30 }
 0x3b4   : > { %v1547_v9 = vpop.eup %1546  ;;  %1068 = vst [vmem:[#allocation9 + $0x28] sm:$0xff] %v1052_v4  ;;  %v1030_v36 = vmul.f32 0.6931472, %v1545_v5  ;;  %v1010_v10 = vpop.xlane.xlu1 %1009 }
 0x3b5   : > { %v1012_v11 = vpop.xlane.xlu0 %1011  ;;  %1069 = vst [vmem:[#allocation9 + $0x30] sm:$0xff] %v1053_v6  ;;  %v1032_v41 = vmul.f32 0.6931472, %v1547_v9  ;;  %1556 = vlog2.f32 %v1010_v10 }
 0x3b6   : > { %v1054_v12 = vsub.f32 %v2111_v48, %v1030_v36  ;;  %1558 = vlog2.f32 %v1012_v11 }
 0x3b7   : > { %v1549_v13 = vpop.eup %1548  ;;  %v1055_v15 = vsub.f32 %v2115_v55, %v1032_v41 }
 0x3b8   : > { %v1551_v14 = vpop.eup %1550  ;;  %1070 = vst [vmem:[#allocation9 + $0x38] sm:$0xff] %v1054_v12  ;;  %v1034_v42 = vmul.f32 0.6931472, %v1549_v13  ;;  %v1014_v17 = vpop.xlane.xlu1 %1013 }
 0x3b9   : > { %1071 = vst [vmem:[#allocation9 + $0x40] sm:$0xff] %v1055_v15  ;;  %v1036_v47 = vmul.f32 0.6931472, %v1551_v14  ;;  %1560 = vlog2.f32 %v1014_v17 }
 0x3ba   : > { %v1056_v19 = vsub.f32 %v2117_v56, %v1034_v42 }
 0x3bb   : > { %v1553_v20 = vpop.eup %1552  ;;  %v1057_v21 = vsub.f32 %v2121_v63, %v1036_v47 }
 0x3bc   : > { %v1555_v22 = vpop.eup %1554  ;;  %1072 = vst [vmem:[#allocation9 + $0x48] sm:$0xff] %v1056_v19  ;;  %v1038_v23 = vmul.f32 0.6931472, %v1553_v20 }
 0x3bd   : > { %1073 = vst [vmem:[#allocation9 + $0x50] sm:$0xff] %v1057_v21  ;;  %v1040_v48 = vmul.f32 0.6931472, %v1555_v22 }
 0x3be   : > { %v1058_v24 = vsub.f32 %v2123_v0, %v1038_v23 }
 0x3bf   : > { %v1557_v55 = vpop.eup %1556  ;;  %v1059_v25 = vsub.f32 %v2128_v7, %v1040_v48 }
 0x3c0   : > { %v1559_v26 = vpop.eup %1558  ;;  %1074 = vst [vmem:[#allocation9 + $0x58] sm:$0xff] %v1058_v24  ;;  %v1042_v27 = vmul.f32 0.6931472, %v1557_v55 }
 0x3c1   : > { %1075 = vst [vmem:[#allocation9 + $0x60] sm:$0xff] %v1059_v25  ;;  %v1044_v28 = vmul.f32 0.6931472, %v1559_v26 }
 0x3c2   : > { %v1060_v56 = vsub.f32 %v2131_v8, %v1042_v27 }
 0x3c3   : > { %v1561_v31 = vpop.eup %1560  ;;  %v1061_v63 = vsub.f32 %v2136_v16, %v1044_v28 }
 0x3c4   : > { %1076 = vst [vmem:[#allocation9 + $0x68] sm:$0xff] %v1060_v56  ;;  %v1046_v32 = vmul.f32 0.6931472, %v1561_v31 }
 0x3c5   : > { %1077 = vst [vmem:[#allocation9 + $0x70] sm:$0xff] %v1061_v63 }
 0x3c6   : > { %v1062_v33 = vsub.f32 %v2139_v18, %v1046_v32 }
 0x3c8   : > { %1078 = vst [vmem:[#allocation9 + $0x78] sm:$0xff] %v1062_v33 }
 0x3c9 PF: > { %s1727_s11 = smov [#allocation9]  }
 0x3ca   : > { %s1085_s18 = sshll.u32 %s1727_s11, 4  ;;  %s1086_s18 = int_to_ptr.vmem [resolvable:$true] %s1085_s18 }
 0x3cb   : > { %s1648_s24 = scalar_lea.vmem %s1086_s18, 2048  ;;  %p1655_p0 = scmp.lt.s32.totalorder %s1086_s18, %s1086_s18 }
 0x3cc   : > { %p1649_p12 = scmp.ne.s32.totalorder %s1086_s18, %s1648_s24  ;;  %p1656_p5 = scmp.lt.s32.totalorder %s1648_s24, %s1648_s24 }
 0x3ce   : > { %p1650_p8 = pnand %p1649_p12, %p1212_p11  ;;  %p1657_p9 = por %p1656_p5, %p1655_p0 }
 0x3d0   : > { %p1651_p10 = pneg %p1650_p8 }
 0x3d2   : > { %p1658_p1 = pnand %p1657_p9, %p1651_p10 }
 0x3d4   : > { %1661 = shalt.err (!%p1658_p1)
}
 0x3d5   : > { %s1662_s15 = scalar_lea.hbm %s2198_s4, 2048 }
 0x3d6   : > { %p1663_p3 = scmp.ne.s32.totalorder %s2198_s4, %s1662_s15  ;;  %p1668_p4 = scmp.lt.u32.totalorder %s1662_s15, %s2198_s4 }
 0x3d8   : > { %p1664_p6 = pnand %p1663_p3, %p1212_p11 }
 0x3da   : > { %p1665_p2 = pneg %p1664_p6 }
 0x3dc   : > { %p1670_p7 = pnand %p1668_p4, %p1665_p2 }
 0x3de   : > { %1673 = shalt.err (!%p1670_p7)
}
 0x3df   : > { %s1728_s30 = smov 128   ;;  %s1729_s13 = smov 8  }
 0x3e0   : > { %1406 = dma.vmem_to_hbm [thread:$0]  (%p1212_p11), %s1086_s18, 2048, %s2198_s4, [#allocation5], %s1728_s30, %s1728_s30, %s1729_s13  }
 0x3e1   : > { %1703 = dma.done.wait (%p1212_p11), [#allocation5], 2048  }
 0x3e2   : > { %1705 = vsyncadd (%p1212_p11), [#allocation5], 4294965248 }
 0x3e3 PF: > { %p14_p13 = scmp.ge.s32.totalorder %s1777_s20, 5   ;;  %s2216_s15 = smov %s1712_s16 }
 0x3e4   : > { %s2217_s16 = smov %s1716_s17  ;;  %s2218_s17 = smov %s1787_s23 }
 0x3e5   : > { %s2219_s18 = smov %s1777_s20  ;;  %16 = sbr.rel (!%p14_p13) target bundleno = 4 (0x4), region = 95 }
 0x3ec   :  { %1101 = vsyncpa [#allocation4], 1 }
 0x3ed   :  { %1103 = vsyncpa [#allocation4 + $0x1], 1 }
 0x3ee   :  { %1104 = vsyncpa [#allocation7], 1 }
 0x3ef   :  { %1105 = vsyncpa [#allocation5], 1 }
 0x3f0   :  { %1107 = vsyncpa [#allocation5 + $0x1], 1 }

</bundles_post_ra>
